<compile_context>
chip_gen: v7x
topology: tpu7x:2x2x1
jax: 0.10.0
libtpu: 0.0.40
codegen_flags: <defaults>
</compile_context>

<pallas_src>
import functools

import jax
import jax.numpy as jnp
from jax.experimental import pallas as pl
from jax.experimental.pallas import tpu as pltpu


def _cdiv(a, b):
    return -(-a // b)


def _round_up(x, m):
    return ((x + m - 1) // m) * m


def _imsitu_loss_kernel(x_ref, gt_ref, out_ref, *,
                        smoothing, n_actual, c_actual, tile_n):
    """One row tile: emits [loss_sum, top1_count, top5_count] partials."""
    confidence = 1.0 - smoothing
    smooth_over_c = smoothing / float(c_actual)

    x = x_ref[...].astype(jnp.float32)                     # (TN, C) per-tile cast
    gt = gt_ref[...]                                       # (TN, 1) int32
    tn, c = x.shape

    # Row validity: the last grid tile may hang off the end of the array and
    # the window then contains undefined data -> neutralize those rows BEFORE
    # the max/exp/log reductions (a trailing `* valid` would not stop NaNs).
    row_ids = (jax.lax.broadcasted_iota(jnp.int32, (tn, 1), 0)
               + pl.program_id(0) * tile_n)
    valid_b = row_ids < n_actual                           # (TN, 1) bool
    valid = valid_b.astype(jnp.float32)
    x = jnp.where(valid_b, x, 0.0)

    # Lane (class) ids as a (1, C) iota; broadcast happens inside the compare.
    class_ids = jax.lax.broadcasted_iota(jnp.int32, (1, c), 1)
    onehot_b = class_ids == gt                             # (TN, C) bool

    # Numerically-stable fused log-softmax pieces.
    m = jnp.max(x, axis=-1, keepdims=True)                 # (TN, 1)
    shifted = x - m                                        # (TN, C)
    lse = jnp.log(jnp.sum(jnp.exp(shifted), axis=-1, keepdims=True))

    # x_tgt = shifted[row, gt]; reused for both the loss and the top-k rank.
    x_tgt = jnp.sum(jnp.where(onehot_b, shifted, 0.0), axis=-1, keepdims=True)
    sum_shifted = jnp.sum(shifted, axis=-1, keepdims=True)

    # loss_i = lse - confidence * shifted[gt] - (smoothing/C) * sum(shifted)
    loss = (lse - confidence * x_tgt - smooth_over_c * sum_shifted) * valid

    # Top-1 / top-5 accuracy: rank of the target logit (strictly-greater count).
    # TODO(synk): exact ties at rank 5 differ from torch.topk's index-order tie
    # break; negligible for continuous float logits.
    rank = jnp.sum(jnp.where(shifted > x_tgt, 1.0, 0.0), axis=-1, keepdims=True)
    top1 = jnp.where(rank < 1.0, valid, 0.0)
    top5 = jnp.where(rank < 5.0, valid, 0.0)

    # One coalesced (1, 3) partial store per tile.
    cols = jnp.concatenate([loss, top1, top5], axis=-1)    # (TN, 3)
    out_ref[0, :, :] = jnp.sum(cols, axis=0, keepdims=True)


def _pick_tile_n(n, c, itemsize, tn_max=512, budget_bytes=8 * 1024 * 1024):
    """Balanced row tile (multiple of 8), capped by a VMEM budget and 512."""
    per_row = c * itemsize * 2                     # logits tile, double-buffered
    tn_cap = max(8, min(tn_max, (budget_bytes // per_row) // 8 * 8))
    # Prefer >= 2 tiles (feeds v7x's second TensorCore) and keep tiles balanced
    # so an awkward N doesn't produce a nearly-empty ragged last tile.
    min_tiles = 2 if n > 8 else 1
    num_tiles = max(_cdiv(n, tn_cap), min_tiles)
    return int(_round_up(_cdiv(n, num_tiles), 8))


def label_smoothing_verb_stats(logits, targets, smoothing=0.3):
    """logits: (N, C); targets: (N, C) scores (gt class = argmax along C).

    Returns (mean label-smoothed loss, top1 accuracy %, top5 accuracy %).
    """
    n, c = logits.shape
    assert targets.shape == (n, c)

    # gt_verbs = targets.max(1)[1]: cheap XLA pass, first-index tie break.
    gt = jnp.argmax(targets, axis=1).astype(jnp.int32).reshape(n, 1)

    tn = _pick_tile_n(n, c, logits.dtype.itemsize)
    num_tiles = _cdiv(n, tn)

    kernel = functools.partial(
        _imsitu_loss_kernel,
        smoothing=float(smoothing), n_actual=n, c_actual=c, tile_n=tn)

    partials = pl.pallas_call(
        kernel,
        out_shape=jax.ShapeDtypeStruct((num_tiles, 1, 3), jnp.float32),
        grid=(num_tiles,),
        in_specs=[
            pl.BlockSpec((tn, c), lambda i: (i, 0)),   # full C: no lane padding
            pl.BlockSpec((tn, 1), lambda i: (i, 0)),   # gt class per row
        ],
        out_specs=pl.BlockSpec((1, 1, 3), lambda i: (i, 0, 0)),
        compiler_params=pltpu.CompilerParams(
            dimension_semantics=("parallel",),
            vmem_limit_bytes=32 * 1024 * 1024,
        ),
    )(logits, gt)

    totals = jnp.sum(partials[:, 0, :], axis=0)        # (3,) cross-tile reduce
    inv_n = 1.0 / float(n)
    loss = totals[0] * inv_n
    top1 = totals[1] * (100.0 * inv_n)
    top5 = totals[2] * (100.0 * inv_n)
    return loss, top1, top5


def vanilla_imsitu_criterion(targets, img_outputs):
    """JAX/Pallas equivalent of VanillaImSituCriterion.forward (eval ignored).

    targets:     (N, C) tensor; gt verb = argmax along C.
    img_outputs: (N, 1, C) verb logits.
    """
    logits = jnp.squeeze(img_outputs, axis=1)          # (N, C)
    loss, top1, top5 = label_smoothing_verb_stats(logits, targets, smoothing=0.3)
    out = {
        "loss_img": loss,
        "verb_acc_top1": top1,
        "verb_acc_top5": top5,
    }
    out["mean_acc"] = (top1 + top5) * 0.5
    return out


if __name__ == "__main__":
    key = jax.random.PRNGKey(0)
    k1, k2 = jax.random.split(key)

    # N deliberately not a multiple of the row tile (exercises the ragged last
    # tile) and C not a multiple of 128 (exercises the full-C BlockSpec path).
    N, C = 20, 200

    gt = jax.random.randint(k1, (N,), 0, C, dtype=jnp.int32)
    targets = jax.nn.one_hot(gt, C, dtype=jnp.float32)                 # (N, C)
    img_outputs = jax.random.normal(k2, (N, 1, C), dtype=jnp.float32)  # (N, 1, C)

    out = vanilla_imsitu_criterion(targets, img_outputs)
    jax.block_until_ready(out)

    # Pure-JAX reference replicating the PyTorch module.
    logits = img_outputs[:, 0, :]
    gt_ref = jnp.argmax(targets, axis=1)
    logprobs = jax.nn.log_softmax(logits, axis=-1)
    nll = -jnp.take_along_axis(logprobs, gt_ref[:, None], axis=-1)[:, 0]
    smooth = -jnp.mean(logprobs, axis=-1)
    loss_ref = jnp.mean(0.7 * nll + 0.3 * smooth)
    top1_ref = jnp.mean((jnp.argmax(logits, axis=-1) == gt_ref).astype(jnp.float32)) * 100.0
    _, top5_idx = jax.lax.top_k(logits, 5)
    top5_ref = jnp.mean(jnp.any(top5_idx == gt_ref[:, None], axis=-1).astype(jnp.float32)) * 100.0
    mean_ref = (top1_ref + top5_ref) * 0.5

    assert jnp.allclose(out["loss_img"], loss_ref, atol=1e-5, rtol=1e-5), (out["loss_img"], loss_ref)
    assert jnp.allclose(out["verb_acc_top1"], top1_ref, atol=1e-4), (out["verb_acc_top1"], top1_ref)
    assert jnp.allclose(out["verb_acc_top5"], top5_ref, atol=1e-4), (out["verb_acc_top5"], top5_ref)
    assert jnp.allclose(out["mean_acc"], mean_ref, atol=1e-4), (out["mean_acc"], mean_ref)
    print("KERNEL_OK")
</pallas_src>

<mosaic_0001>
module attributes {stable_mosaic.version = 11 : i64} {
  func.func @_imsitu_loss_kernel(%arg0: i32, %arg1: memref<16x200xf32, #tpu.memory_space<vmem>>, %arg2: memref<16x1xi32, #tpu.memory_space<vmem>>, %arg3: memref<1x1x3xf32, #tpu.memory_space<vmem>>) attributes {dimension_semantics = [#tpu.dimension_semantics<parallel>], iteration_bounds = array<i64: 2>, scalar_prefetch = 0 : i64, scratch_operands = 0 : i64, tpu.core_type = #tpu.core_type<tc>, window_params = [{transform_indices = @transform_0, window_bounds = array<i64: 16, 200>}, {transform_indices = @transform_1, window_bounds = array<i64: 16, 1>}, {transform_indices = @transform_2, window_bounds = array<i64: 1, 1, 3>}]} {
    %c0 = arith.constant 0 : index
    %c0_0 = arith.constant 0 : index
    %0 = vector.load %arg1[%c0, %c0_0] : memref<16x200xf32, #tpu.memory_space<vmem>>, vector<16x200xf32>
    %c0_1 = arith.constant 0 : index
    %c0_2 = arith.constant 0 : index
    %1 = vector.load %arg2[%c0_1, %c0_2] : memref<16x1xi32, #tpu.memory_space<vmem>>, vector<16x1xi32>
    %2 = tpu.iota {dimensions = array<i32: 0>} : vector<16x1xi32>
    %c16_i32 = arith.constant 16 : i32
    %3 = arith.muli %arg0, %c16_i32 : i32
    %4 = vector.broadcast %3 : i32 to vector<16x1xi32>
    %5 = arith.addi %2, %4 : vector<16x1xi32>
    %c20_i32 = arith.constant 20 : i32
    %6 = vector.broadcast %c20_i32 : i32 to vector<16x1xi32>
    %7 = arith.cmpi slt, %5, %6 : vector<16x1xi32>
    %8 = arith.extui %7 : vector<16x1xi1> to vector<16x1xi32>
    %9 = arith.sitofp %8 : vector<16x1xi32> to vector<16x1xf32>
    %cst = arith.constant 0.000000e+00 : f32
    %10 = vector.shape_cast %7 : vector<16x1xi1> to vector<16x1xi1>
    %11 = vector.broadcast %10 : vector<16x1xi1> to vector<16x200xi1>
    %12 = vector.broadcast %cst : f32 to vector<16x200xf32>
    %13 = arith.select %11, %0, %12 : vector<16x200xi1>, vector<16x200xf32>
    %14 = tpu.iota {dimensions = array<i32: 1>} : vector<1x200xi32>
    %15 = vector.broadcast %14 : vector<1x200xi32> to vector<16x200xi32>
    %16 = vector.broadcast %1 : vector<16x1xi32> to vector<16x200xi32>
    %17 = arith.cmpi eq, %15, %16 : vector<16x200xi32>
    %cst_3 = arith.constant dense<0xFF800000> : vector<16xf32>
    %18 = vector.multi_reduction <maximumf>, %13, %cst_3 [1] : vector<16x200xf32> to vector<16xf32>
    %19 = vector.shape_cast %18 : vector<16xf32> to vector<16x1xf32>
    %20 = vector.broadcast %19 : vector<16x1xf32> to vector<16x200xf32>
    %21 = arith.subf %13, %20 : vector<16x200xf32>
    %22 = math.exp %21 : vector<16x200xf32>
    %cst_4 = arith.constant dense<0.000000e+00> : vector<16xf32>
    %23 = vector.multi_reduction <add>, %22, %cst_4 [1] : vector<16x200xf32> to vector<16xf32>
    %24 = vector.shape_cast %23 : vector<16xf32> to vector<16x1xf32>
    %25 = math.log %24 : vector<16x1xf32>
    %cst_5 = arith.constant 0.000000e+00 : f32
    %26 = vector.broadcast %cst_5 : f32 to vector<16x200xf32>
    %27 = arith.select %17, %21, %26 : vector<16x200xi1>, vector<16x200xf32>
    %cst_6 = arith.constant dense<0.000000e+00> : vector<16xf32>
    %28 = vector.multi_reduction <add>, %27, %cst_6 [1] : vector<16x200xf32> to vector<16xf32>
    %29 = vector.shape_cast %28 : vector<16xf32> to vector<16x1xf32>
    %cst_7 = arith.constant dense<0.000000e+00> : vector<16xf32>
    %30 = vector.multi_reduction <add>, %21, %cst_7 [1] : vector<16x200xf32> to vector<16xf32>
    %31 = vector.shape_cast %30 : vector<16xf32> to vector<16x1xf32>
    %cst_8 = arith.constant 0.699999988 : f32
    %32 = vector.broadcast %cst_8 : f32 to vector<16x1xf32>
    %33 = arith.mulf %32, %29 : vector<16x1xf32>
    %34 = arith.subf %25, %33 : vector<16x1xf32>
    %cst_9 = arith.constant 1.500000e-03 : f32
    %35 = vector.broadcast %cst_9 : f32 to vector<16x1xf32>
    %36 = arith.mulf %35, %31 : vector<16x1xf32>
    %37 = arith.subf %34, %36 : vector<16x1xf32>
    %38 = arith.mulf %37, %9 : vector<16x1xf32>
    %39 = vector.broadcast %29 : vector<16x1xf32> to vector<16x200xf32>
    %40 = arith.cmpf ogt, %21, %39 : vector<16x200xf32>
    %cst_10 = arith.constant 1.000000e+00 : f32
    %cst_11 = arith.constant 0.000000e+00 : f32
    %41 = vector.broadcast %cst_10 : f32 to vector<16x200xf32>
    %42 = vector.broadcast %cst_11 : f32 to vector<16x200xf32>
    %43 = arith.select %40, %41, %42 : vector<16x200xi1>, vector<16x200xf32>
    %cst_12 = arith.constant dense<0.000000e+00> : vector<16xf32>
    %44 = vector.multi_reduction <add>, %43, %cst_12 [1] : vector<16x200xf32> to vector<16xf32>
    %45 = vector.shape_cast %44 : vector<16xf32> to vector<16x1xf32>
    %cst_13 = arith.constant 1.000000e+00 : f32
    %46 = vector.broadcast %cst_13 : f32 to vector<16x1xf32>
    %47 = arith.cmpf olt, %45, %46 : vector<16x1xf32>
    %cst_14 = arith.constant 0.000000e+00 : f32
    %48 = vector.broadcast %cst_14 : f32 to vector<16x1xf32>
    %49 = arith.select %47, %9, %48 : vector<16x1xi1>, vector<16x1xf32>
    %cst_15 = arith.constant 5.000000e+00 : f32
    %50 = vector.broadcast %cst_15 : f32 to vector<16x1xf32>
    %51 = arith.cmpf olt, %45, %50 : vector<16x1xf32>
    %cst_16 = arith.constant 0.000000e+00 : f32
    %52 = vector.broadcast %cst_16 : f32 to vector<16x1xf32>
    %53 = arith.select %51, %9, %52 : vector<16x1xi1>, vector<16x1xf32>
    %54 = tpu.concatenate %38, %49, %53 in 1 : vector<16x1xf32>, vector<16x1xf32>, vector<16x1xf32> -> vector<16x3xf32>
    %cst_17 = arith.constant dense<0.000000e+00> : vector<3xf32>
    %55 = vector.multi_reduction <add>, %54, %cst_17 [0] : vector<16x3xf32> to vector<3xf32>
    %56 = vector.shape_cast %55 : vector<3xf32> to vector<1x3xf32>
    %c0_18 = arith.constant 0 : index
    %c0_19 = arith.constant 0 : index
    %c0_20 = arith.constant 0 : index
    %57 = vector.load %arg3[%c0_18, %c0_19, %c0_20] : memref<1x1x3xf32, #tpu.memory_space<vmem>>, vector<1x1x3xf32>
    %58 = vector.shape_cast %57 : vector<1x1x3xf32> to vector<1x3xf32>
    %59 = vector.shape_cast %56 : vector<1x3xf32> to vector<1x1x3xf32>
    tpu.vector_store %arg3[%c0_18, %c0_19, %c0_20], %59 {strides = array<i32>} : memref<1x1x3xf32, #tpu.memory_space<vmem>>, vector<1x1x3xf32>,
    return
  }
  func.func @transform_0(%arg0: i32) -> (i32, i32) {
    %c0_i32 = arith.constant 0 : i32
    %c0_i32_0 = arith.constant 0 : i32
    return %arg0, %c0_i32 : i32, i32
  }
  func.func @transform_1(%arg0: i32) -> (i32, i32) {
    %c0_i32 = arith.constant 0 : i32
    %c0_i32_0 = arith.constant 0 : i32
    return %arg0, %c0_i32 : i32, i32
  }
  func.func @transform_2(%arg0: i32) -> (i32, i32, i32) {
    %c0_i32 = arith.constant 0 : i32
    %c0_i32_0 = arith.constant 0 : i32
    %c0_i32_1 = arith.constant 0 : i32
    return %arg0, %c0_i32, %c0_i32_0 : i32, i32, i32
  }
}

</mosaic_0001>

<bundles_post_ra>
// kernel: tpu_custom_call.1
= control target key start
LH: loop header
LB: loop body
LE: loop exit
PB: predicated region body
PF: predicated region fallthrough
CT: control target
= control target key end

     0   :  { %7 = vsyncpa [#allocation3], 0  ;;  %s848_s0 = inlined_call_operand.hbm [shape: f32[20,200], index: 0, kind: input, shape index: {}]   ;;  %s849_s1 = inlined_call_operand.vmem [shape: s32[20,1], index: 1, kind: input, shape index: {}]   ;;  %s850_s2 = inlined_call_operand.hbm [shape: f32[2,1,3], index: 2, kind: output, shape index: {}]  }
   0x1   :  { %9 = vsyncpa [#allocation3 + $0x1], 0 }
   0x2   :  { %10 = vsyncpa [#allocation4], 0 }
   0x3   :  { %12 = vsyncpa [#allocation4 + $0x1], 0  ;;  %s651_s9 = smov 0   ;;  %s653_s10 = smov 0  }
   0x4   :  { %s655_s11 = smov 0   ;;  %s657_s12 = smov 0  }
   0x5 LB: > { %s672_s13 = sadd.s32 4294967295, %s628_s12   ;;  %s451_s14 = sadd.s32 4294967294, %s628_s12   ;;  %s628_s12 = sphi %s657_s12, %s860_s12   ;;  %s624_s11 = sphi %s655_s11, %s859_s11   ;;  %s620_s10 = sphi %s653_s10, %s858_s10   ;;  %s616_s9 = sphi %s651_s9, %s857_s9  }
   0x6   : > { %s676_s15 = sadd.s32 1, %s628_s12   ;;  %s25_s16 = sadd.s32 1, %s624_s11 }
   0x7   : > { %s22_s17 = ssub.s32 %s628_s12, %s676_s15  ;;  %p32_p0 = scmp.ne.s32.totalorder %s624_s11, %s620_s10 }
   0x8   : > { %p23_p1 = scmp.eq.s32.totalorder %s22_s17, 0  ;;  %p33_p2 = scmp.eq.s32.totalorder %s628_s12, 0 }
   0x9   : > { %p38_p3 = scmp.ne.s32.totalorder %s620_s10, %s616_s9  ;;  %p39_p4 = scmp.eq.s32.totalorder %s672_s13, 0 }
   0xa   : > { %s688_s18 = scalar_select %p23_p1, %s624_s11, %s25_s16  }
   0xb   : > { %p34_p5 = por %p33_p2, %p32_p0  ;;  %p690_p6 = por %p39_p4, %p38_p3 }
   0xc   : > { %p88_p7 = scmp.eq.s32.totalorder %s672_s13, 1  ;;  %p94_p8 = scmp.eq.s32.totalorder %s451_s14, 1 }
   0xd   : > { %p851_p11 = scmp.ge.s32.totalorder %s628_s12, 2 }
   0xe   : > { %p695_p9 = por %p88_p7, %p32_p0  ;;  %p699_p10 = por %p94_p8, %p38_p3 }
   0xf   : > { %110 = sbr.rel (%p851_p11) target bundleno = 57 (0x39), region = 16 }
  0x10   : > { %s854_s21 = scalar_select %p699_p10, 1, 0 }
  0x16   : > { %113 = sbr.rel (!%p34_p5) target bundleno = 57 (0x39), region = 20  ;;  %s114_s22 = sand.u32 (%p34_p5), 1, %s624_s11  }
  0x17   : > { %s455_s23 = sshll.u32 (%p34_p5), %s628_s12, 1  ;;  %s454_s24 = sshll.u32 (%p34_p5), %s114_s22, 5 }
  0x18   : > { %s120_s25 = ssub.s32 (%p34_p5), 3, %s455_s23  ;;  %s711_s28 = scalar_lea.sflag (%p34_p5), [#allocation3], %s114_s22 }
  0x19   : > { %p121_p12 = scmp.lt.s32.totalorder (%p34_p5), %s120_s25, 2  ;;  %s118_s29 = scalar_lea.vmem (%p34_p5), [#allocation2], %s454_s24 }
  0x1d   : > { %s862_s25 = smov (!%p121_p12, %s120_s25), 2 }
  0x1e   : > { %s708_s26 = sshll.u32 %s862_s25, 8 }
  0x1f   : > { %s126_s27 = ssub.s32 512, %s708_s26 }
  0x20   : > { %127 = vsyncadd %s711_s28, %s126_s27  ;;  %p458_p13 = scmp.ne.s32.totalorder %s708_s26, 0  ;;  %s475_s30 = sshll.u32 %s628_s12, 9 }
  0x21   : > { %s719_s5 = scalar_lea.hbm %s848_s0, %s475_s30  ;;  %s133_s6 = sshll.u32 %s118_s29, 4  ;;  %s721_s6 = int_to_ptr.vmem [resolvable:$true] %s133_s6 }
  0x22   : > { %s534_s7 = scalar_lea.hbm %s719_s5, %s708_s26  ;;  %s538_s16 = scalar_lea.hbm %s848_s0, 768 }
  0x23   : > { %p535_p0 = scmp.ne.s32.totalorder %s719_s5, %s534_s7  ;;  %p539_p3 = scmp.lt.u32.totalorder %s719_s5, %s848_s0 }
  0x24   : > { %p540_p4 = scmp.lt.u32.totalorder %s538_s16, %s534_s7  ;;  %p542_p7 = scmp.lt.u32.totalorder %s534_s7, %s719_s5 }
  0x25   : > { %p536_p1 = pnand %p535_p0, %p458_p13 }
  0x26   : > { %p541_p5 = por %p540_p4, %p539_p3 }
  0x27   : > { %p537_p2 = pneg %p536_p1 }
  0x28   : > { %p543_p8 = por %p542_p7, %p541_p5 }
  0x2a   : > { %p544_p12 = pnand %p543_p8, %p537_p2 }
  0x2c   : > { %547 = shalt.err (!%p544_p12)
}
  0x2d   : > { %s548_s23 = scalar_lea.vmem %s721_s6, %s708_s26  ;;  %s630_s24 = smov [#allocation2]  }
  0x2e   : > { %p549_p0 = scmp.ne.s32.totalorder %s721_s6, %s548_s23  ;;  %s552_s25 = sshll.u32 %s630_s24, 4  ;;  %s553_s25 = int_to_ptr.vmem [resolvable:$false] %s552_s25 }
  0x2f   : > { %s554_s27 = scalar_lea.vmem %s553_s25, 1024  ;;  %p555_p10 = scmp.lt.s32.totalorder %s721_s6, %s553_s25 }
  0x30   : > { %p550_p1 = pnand %p549_p0, %p458_p13  ;;  %p556_p3 = scmp.lt.s32.totalorder %s554_s27, %s548_s23 }
  0x32   : > { %p551_p11 = pneg %p550_p1  ;;  %p557_p4 = por %p556_p3, %p555_p10 }
  0x34   : > { %p558_p5 = pnand %p557_p4, %p551_p11 }
  0x36   : > { %561 = shalt.err (!%p558_p5)
}
  0x37   : > { %s631_s29 = smov 256   ;;  %s632_s30 = smov 16  }
  0x38   : > { %139 = dma.hbm_to_vmem [thread:$0]  (%p458_p13), %s719_s5, %s708_s26, %s721_s6, %s711_s28, %s631_s29, %s631_s29, %s632_s30  }
  0x39 PF: > { %p463_p2 = scmp.ge.s32.totalorder %s628_s12, 1  ;;  %p158_p7 = scmp.lt.s32.totalorder %s628_s12, 3 }
  0x3b   : > { %p159_p8 = pnand %p463_p2, %p158_p7 }
  0x3c   : > { %s751_s3 = sand.u32 (!%p159_p8), 1, %s620_s10  }
  0x3d   : > { %162 = sbr.rel (%p159_p8) target bundleno = 554 (0x22a), region = 28  ;;  %s464_s4 = sshll.u32 (!%p159_p8), %s751_s3, 5 }
  0x3e   : > { %s165_s7 = scalar_lea.sflag (!%p159_p8), [#allocation3], %s751_s3  ;;  %s168_s8 = scalar_lea.vmem (!%p159_p8), [#allocation2], %s464_s4 }
  0x44   : > { %607 = dma.done.wait (%p690_p6), %s165_s7, 512  }
  0x45   : > { %609 = vsyncadd (%p690_p6), %s165_s7, 4294966784  ;;  %v223_v0 = vlaneseq  ;;  %s467_s26 = sshll.u32 %s672_s13, 4  ;;  %s465_s28 = sshll.u32 %s672_s13, 1  ;;  %v633_v2 = vmov 0   ;;  %vm255_vm1 = vcmask 588800   ;;  %v217_v7 = vld [vmem:[%s168_s8] sm:$0xff] }
  0x46   : > { %v227_v1 = vstv %s467_s26  ;;  %520 = vset.pattern.permute.xlu1 %v633_v2  ;;  %p208_p10 = scmp.lt.s32.totalorder %s465_s28, 2  ;;  %521 = vset.pattern.permute.xlu0 %v633_v2  ;;  %v218_v8 = vld [vmem:[%s168_s8 + $0x8] sm:$0xff]  ;;  %v219_v9 = vld [vmem:[%s168_s8 + $0x10] sm:$0xff]  ;;  %v220_v12 = vld [vmem:[%s168_s8 + $0x18] sm:$0xff]  ;;  %v634_v56 = vmov 0.0   ;;  %vm342_vm11 = vcmask 7168   ;;  %s804_s24 = scalar_lea.hbm %s850_s2, %s467_s26 }
  0x47   : > { %v224_v3 = vshrl.u32 %v223_v0, 7  ;;  %v243_v21 = vand.u32 127, %v223_v0  ;;  %vm345_vm12 = vcmask 15360   ;;  %s196_s16 = scalar_lea.vmem [#allocation5], %s751_s3  ;;  %s361_s25 = scalar_lea.sflag [#allocation4], %s751_s3 }
  0x48   : > { %s864_s28 = smov (!%p208_p10, %s465_s28), 2  ;;  %s373_s17 = sshll.u32 %s196_s16, 4  ;;  %s806_s17 = int_to_ptr.vmem [resolvable:$true] %s373_s17 }
  0x49   : > { %v763_v4 = vadd.s32 %v227_v1, %v224_v3  ;;  %v225_v5 = vadd.s32 8, %v224_v3  ;;  %s466_s5 = sshll.u32 %s864_s28, 3  ;;  %v244_v22 = vadd.s32 128, %v243_v21  ;;  %s562_s27 = scalar_lea.vmem %s806_s17, 16 }
  0x4a   : > { %s211_s14 = scalar_lea.vmem %s849_s1, %s466_s5  ;;  %p563_p6 = scmp.ne.s32.totalorder %s806_s17, %s562_s27 }
  0x4b   : > { %vm230_vm0 = vcmp.lt.s32.totalorder %v763_v4, 20  ;;  %v766_v6 = vadd.s32 %v227_v1, %v225_v5  ;;  %v221_v13 = vld [vmem:[%s211_s14] sm:$0xff]  ;;  %v222_v19 = vld [vmem:[%s211_s14 + $0x8] sm:$0xff]  ;;  %s635_s29 = smov [#allocation5]  }
  0x4c   : > { %v238_v10 = vsel %vm230_vm0, %v217_v7, 0.0  ;;  %v239_v11 = vsel %vm230_vm0, %v218_v8, 0.0  ;;  %246 = vperm.xlu1 %520, %v221_v13   ;;  %p564_p11 = pnand %p563_p6, %p695_p9  ;;  %s566_s30 = sshll.u32 %s635_s29, 4  ;;  %s567_s30 = int_to_ptr.vmem [resolvable:$false] %s566_s30 }
  0x4d   : > { %vm231_vm2 = vcmp.lt.s32.totalorder %v766_v6, 20  ;;  %v256_v14 = vsel %vm255_vm1, %v239_v11, -inf  ;;  %s568_s13 = scalar_lea.vmem %s567_s30, 32  ;;  %p569_p12 = scmp.lt.s32.totalorder %s806_s17, %s567_s30 }
  0x4e   : > { %v240_v15 = vsel %vm231_vm2, %v219_v9, 0.0  ;;  %v241_v16 = vsel %vm231_vm2, %v220_v12, 0.0  ;;  %v257_v17 = vmax.f32 %v238_v10, %v256_v14  ;;  %v468_v12 = vsel %vm230_vm0, 1.0, %v634_v56  ;;  %p565_p13 = pneg %p564_p11  ;;  %p570_p0 = scmp.lt.s32.totalorder %s568_s13, %s562_s27 }
  0x4f   : > { %v260_v18 = vsel %vm255_vm1, %v241_v16, -inf  ;;  %v469_v4 = vsel %vm231_vm2, 1.0, %v634_v56  ;;  %vm358_vm2 = vcmask 16384  }
  0x50   : > { %258 = vmax.xlane.f32.xlu0 %v257_v17  ;;  %v261_v20 = vmax.f32 %v240_v15, %v260_v18  ;;  %249 = vperm.xlu1 %520, %v222_v19   ;;  %p571_p1 = por %p570_p0, %p569_p12 }
  0x52   : > { %p572_p3 = pnand %p571_p1, %p565_p13 }
  0x54   : > { %262 = vmax.xlane.f32.xlu0 %v261_v20 }
  0xcb   : > { %v247_v23 = vpop.permute.xlu1 %246 }
  0xcc   : > { %vm251_vm3 = vcmp.eq.s32.totalorder %v243_v21, %v247_v23  ;;  %vm252_vm4 = vcmp.eq.s32.totalorder %v244_v22, %v247_v23 }
  0xcf   : > { %v250_v29 = vpop.permute.xlu1 %249 }
  0xd0   : > { %vm253_vm5 = vcmp.eq.s32.totalorder %v243_v21, %v250_v29  ;;  %vm254_vm6 = vcmp.eq.s32.totalorder %v244_v22, %v250_v29 }
  0xdd   : > { %v259_v24 = vpop.xlane.xlu0 %258 }
  0xde   : > { %v264_v25 = vsub.f32 %v238_v10, %v259_v24  ;;  %v265_v26 = vsub.f32 %v239_v11, %v259_v24 }
  0xe0   : > { %v268_v27 = vmul.f32 1.442695, %v264_v25  ;;  %v270_v28 = vmul.f32 1.442695, %v265_v26  ;;  %v288_v30 = vsel %vm251_vm3, %v264_v25, 0.0  ;;  %v289_v31 = vsel %vm252_vm4, %v265_v26, 0.0 }
  0xe1   : > { %v263_v32 = vpop.xlane.xlu0 %262  ;;  %v292_v33 = vsel %vm255_vm1, %v289_v31, 0.0  ;;  %v300_v51 = vsel %vm255_vm1, %v265_v26, 0.0 }
  0xe2   : > { %522 = vpow2.f32 %v268_v27  ;;  %v266_v34 = vsub.f32 %v240_v15, %v263_v32  ;;  %v267_v35 = vsub.f32 %v241_v16, %v263_v32  ;;  %v293_v36 = vadd.f32 %v292_v33, %v288_v30 }
  0xe3   : > { %524 = vpow2.f32 %v270_v28  ;;  %v301_v52 = vadd.f32 %v300_v51, %v264_v25 }
  0xe4   : > { %v272_v37 = vmul.f32 1.442695, %v266_v34  ;;  %v274_v38 = vmul.f32 1.442695, %v267_v35  ;;  %294 = vadd.xlane.f32.xlu0 %v293_v36  ;;  %v290_v39 = vsel %vm253_vm5, %v266_v34, 0.0  ;;  %v291_v40 = vsel %vm254_vm6, %v267_v35, 0.0 }
  0xe5   : > { %v296_v41 = vsel %vm255_vm1, %v291_v40, 0.0  ;;  %v304_v53 = vsel %vm255_vm1, %v267_v35, 0.0 }
  0xe6   : > { %526 = vpow2.f32 %v272_v37  ;;  %v297_v42 = vadd.f32 %v296_v41, %v290_v39  ;;  %v305_v54 = vadd.f32 %v304_v53, %v266_v34 }
  0xe7   : > { %528 = vpow2.f32 %v274_v38 }
  0xe8   : > { %298 = vadd.xlane.f32.xlu1 %v297_v42 }
  0xec   : > { %v523_v43 = vpop.eup %522 }
  0xed   : > { %v525_v44 = vpop.eup %524 }
  0xee   : > { %v276_v45 = vsel %vm255_vm1, %v525_v44, 0.0 }
  0xef   : > { %v277_v46 = vadd.f32 %v523_v43, %v276_v45 }
  0xf0   : > { %v527_v47 = vpop.eup %526 }
  0xf1   : > { %v529_v48 = vpop.eup %528  ;;  %278 = vadd.xlane.f32.xlu0 %v277_v46 }
  0xf2   : > { %v280_v49 = vsel %vm255_vm1, %v529_v48, 0.0 }
  0xf3   : > { %v281_v50 = vadd.f32 %v527_v47, %v280_v49 }
  0xf5   : > { %282 = vadd.xlane.f32.xlu0 %v281_v50 }
  0xf9   : > { %302 = vadd.xlane.f32.xlu0 %v301_v52 }
  0xfd   : > { %306 = vadd.xlane.f32.xlu0 %v305_v54 }
 0x171   : > { %v295_v55 = vpop.xlane.xlu0 %294 }
 0x172   : > { %vm319_vm7 = vcmp.gt.f32.partialorder %v265_v26, %v295_v55  ;;  %vm318_vm8 = vcmp.gt.f32.partialorder %v264_v25, %v295_v55  ;;  %v308_v8 = vmul.f32 0.7, %v295_v55 }
 0x173   : > { %v322_v57 = vsel %vm318_vm8, 1.0, %v634_v56  ;;  %v323_v58 = vsel %vm319_vm7, 1.0, %v634_v56 }
 0x174   : > { %v326_v59 = vsel %vm255_vm1, %v323_v58, 0.0 }
 0x175   : > { %v299_v60 = vpop.xlane.xlu1 %298  ;;  %v327_v61 = vadd.f32 %v326_v59, %v322_v57 }
 0x176   : > { %vm320_vm9 = vcmp.gt.f32.partialorder %v266_v34, %v299_v60  ;;  %vm321_vm10 = vcmp.gt.f32.partialorder %v267_v35, %v299_v60  ;;  %v309_v17 = vmul.f32 0.7, %v299_v60 }
 0x177   : > { %v325_v62 = vsel %vm321_vm10, 1.0, %v634_v56  ;;  %328 = vadd.xlane.f32.xlu0 %v327_v61  ;;  %v324_v63 = vsel %vm320_vm9, 1.0, %v634_v56 }
 0x178   : > { %v330_v0 = vsel %vm255_vm1, %v325_v62, 0.0  ;;  %vm348_vm1 = vcmask 23552  }
 0x179   : > { %v331_v1 = vadd.f32 %v330_v0, %v324_v63 }
 0x17b   : > { %332 = vadd.xlane.f32.xlu0 %v331_v1 }
 0x17e   : > { %v279_v2 = vpop.xlane.xlu0 %278 }
 0x17f   : > { %530 = vlog2.f32 %v279_v2 }
 0x182   : > { %v283_v3 = vpop.xlane.xlu0 %282 }
 0x183   : > { %532 = vlog2.f32 %v283_v3 }
 0x186   : > { %v303_v7 = vpop.xlane.xlu0 %302 }
 0x187   : > { %v312_v11 = vmul.f32 0.0015, %v303_v7 }
 0x189   : > { %v531_v5 = vpop.eup %530 }
 0x18a   : > { %v285_v9 = vmul.f32 0.6931472, %v531_v5  ;;  %v307_v18 = vpop.xlane.xlu0 %306 }
 0x18b   : > { %v313_v20 = vmul.f32 0.0015, %v307_v18 }
 0x18c   : > { %v310_v10 = vsub.f32 %v285_v9, %v308_v8 }
 0x18d   : > { %v533_v15 = vpop.eup %532 }
 0x18e   : > { %v314_v13 = vsub.f32 %v310_v10, %v312_v11  ;;  %v287_v16 = vmul.f32 0.6931472, %v533_v15 }
 0x190   : > { %v316_v14 = vmul.f32 %v468_v12, %v314_v13  ;;  %v311_v19 = vsub.f32 %v287_v16, %v309_v17 }
 0x192   : > { %v315_v22 = vsub.f32 %v311_v19, %v313_v20 }
 0x194   : > { %v317_v28 = vmul.f32 %v469_v4, %v315_v22 }
 0x204   : > { %v329_v21 = vpop.xlane.xlu0 %328 }
 0x205   : > { %vm334_vm13 = vcmp.lt.f32.partialorder %v329_v21, 1.0  ;;  %vm338_vm14 = vcmp.lt.f32.partialorder %v329_v21, 5.0 }
 0x206   : > { %v336_v23 = vsel %vm334_vm13, %v468_v12, 0.0  ;;  %v340_v24 = vsel %vm338_vm14, %v468_v12, 0.0 }
 0x207   : > { %v343_v25 = vsel %vm342_vm11, %v316_v14, %v336_v23 }
 0x208   : > { %v346_v26 = vsel %vm345_vm12, %v343_v25, %v340_v24  ;;  %v333_v27 = vpop.xlane.xlu0 %332 }
 0x209   : > { %vm335_vm15 = vcmp.lt.f32.partialorder %v333_v27, 1.0  ;;  %vm339_vm0 = vcmp.lt.f32.partialorder %v333_v27, 5.0  ;;  %v349_v6 = vsel %vm348_vm1, %v346_v26, 0.0 }
 0x20a   : > { %v337_v29 = vsel %vm335_vm15, %v469_v4, 0.0  ;;  %v341_v30 = vsel %vm339_vm0, %v469_v4, 0.0 }
 0x20b   : > { %v344_v31 = vsel %vm342_vm11, %v317_v28, %v337_v29 }
 0x20c   : > { %v347_v32 = vsel %vm345_vm12, %v344_v31, %v341_v30 }
 0x20d   : > { %v350_v33 = vsel %vm348_vm1, %v347_v32, 0.0 }
 0x20e   : > { %v351_v34 = vadd.f32 %v350_v33, %v349_v6 }
 0x210   : > { %v352_v35 = vrot.slane %v351_v34, 4 }
 0x212   : > { %v353_v36 = vadd.f32 %v352_v35, %v351_v34 }
 0x214   : > { %v354_v37 = vrot.slane %v353_v36, 2 }
 0x216   : > { %v355_v38 = vadd.f32 %v354_v37, %v353_v36 }
 0x218   : > { %v356_v39 = vrot.slane %v355_v38, 1 }
 0x21a   : > { %v357_v40 = vadd.f32 %v356_v39, %v355_v38 }
 0x21c   : > { %359 = vst.msk [vmem:[%s196_s16] sm:$0x1] %vm358_vm2, %v357_v40 }
 0x21d   : > { %575 = shalt.err (!%p572_p3)
}
 0x21e   : > { %s576_s3 = scalar_lea.hbm %s804_s24, 16  ;;  %s580_s8 = scalar_lea.hbm %s850_s2, 32 }
 0x21f   : > { %p577_p4 = scmp.ne.s32.totalorder %s804_s24, %s576_s3  ;;  %p581_p7 = scmp.lt.u32.totalorder %s804_s24, %s850_s2 }
 0x220   : > { %p582_p8 = scmp.lt.u32.totalorder %s580_s8, %s576_s3  ;;  %p584_p6 = scmp.lt.u32.totalorder %s576_s3, %s804_s24 }
 0x221   : > { %p578_p5 = pnand %p577_p4, %p695_p9 }
 0x222   : > { %p583_p10 = por %p582_p8, %p581_p7 }
 0x223   : > { %p579_p2 = pneg %p578_p5 }
 0x224   : > { %p585_p11 = por %p584_p6, %p583_p10 }
 0x226   : > { %p586_p13 = pnand %p585_p11, %p579_p2 }
 0x228   : > { %589 = shalt.err (!%p586_p13)
}
 0x229   : > { %477 = dma.vmem_to_hbm [thread:$0]  (%p695_p9), %s806_s17, 16, %s804_s24, %s361_s25  }
 0x22a PF: > { %s385_s5 = sand.u32 1, %s616_s9   ;;  %p855_p12 = scmp.ne.s32.totalorder %s854_s21, 0 }
 0x22b   : > { %p856_p0 = scmp.ge.s32.totalorder %s628_s12, 2  ;;  %s386_s19 = scalar_lea.sflag [#allocation4], %s385_s5 }
 0x22d   : > { %p480_p1 = pnand %p856_p0, %p855_p12 }
 0x22f   : > { %611 = dma.done.wait (!%p480_p1), %s386_s19, 16  }
 0x230   : > { %613 = vsyncadd (!%p480_p1), %s386_s19, 4294967280  ;;  %p15_p3 = scmp.ge.s32.totalorder %s676_s15, 4   ;;  %s857_s9 = smov %s620_s10 }
 0x231   : > { %s858_s10 = smov %s624_s11  ;;  %s859_s11 = smov %s688_s18 }
 0x232   : > { %s860_s12 = smov %s676_s15  ;;  %17 = sbr.rel (!%p15_p3) target bundleno = 5 (0x5), region = 76 }
 0x239   :  { %390 = vsyncpa [#allocation3], 1 }
 0x23a   :  { %392 = vsyncpa [#allocation3 + $0x1], 1 }
 0x23b   :  { %393 = vsyncpa [#allocation4], 1 }
 0x23c   :  { %395 = vsyncpa [#allocation4 + $0x1], 1 }

</bundles_post_ra>
